<compile_context>
chip_gen: v7x
topology: tpu7x:2x2x1
jax: 0.10.0
libtpu: 0.0.40
codegen_flags: <defaults>
</compile_context>

<pallas_src>
import jax
import jax.numpy as jnp
from jax import lax
from jax.experimental import pallas as pl
from jax.experimental.pallas import tpu as pltpu

# ---- model hyper-parameters (small, consistent with the module's __init__) ----
VOCAB = 50
EMBED = 32
SEQ = 16
BATCH = 2
FILTERS = 16
KERNEL_SIZES = (3, 4, 5)
OUT = 1                                   # single class score (forward returns the logit)

K_MAX = max(KERNEL_SIZES)                 # 5
MAX_PAD = K_MAX - 2                       # padding of the widest conv (k-2) = 3
SEQ_PAD = SEQ + 2 * MAX_PAD               # 22: padded sequence fed to the kernel
L_MAX = SEQ + K_MAX - 3                   # 18: longest conv output length (k=5)
NF = len(KERNEL_SIZES) * FILTERS          # 48: concatenated feature width


def cnn_text_kernel(emb_ref, wpack_ref, params_ref, out_ref):
    """Single invocation: all batch rows, all conv branches, pooling and FC fused."""
    bconv = params_ref[0:1, :]            # (1, NF)  concatenated conv biases
    fcw   = params_ref[1:2, :]            # (1, NF)  fc weight row (PyTorch (OUT, in), OUT=1)
    fcb   = params_ref[2:3, 0:OUT]        # (1, OUT) fc bias
    lens  = params_ref[3:4, :]            # (1, NF)  valid conv length per output lane

    # one hoisted position iota; positions >= a branch's conv length are masked to 0
    pos = lax.broadcasted_iota(jnp.int32, (L_MAX, NF), 0).astype(jnp.float32)
    valid = pos < lens                    # (L_MAX, NF)

    wpack = wpack_ref[...]                # (K_MAX*EMBED, NF) bf16, zero-padded per branch

    pooled_rows = []
    for b in range(BATCH):                # static unroll, B is tiny
        emb_b = emb_ref[b]                # (SEQ_PAD, EMBED) f32
        # im2col: K_MAX shifted windows side by side along lanes -> (L_MAX, K_MAX*EMBED)
        slab = jnp.concatenate(
            [emb_b[dk:dk + L_MAX, :] for dk in range(K_MAX)], axis=-1)
        # ONE MXU contraction computes all three conv branches (bf16 inputs, f32 accumulate)
        conv = jnp.dot(slab.astype(jnp.bfloat16), wpack,
                       preferred_element_type=jnp.float32)        # (L_MAX, NF) f32
        conv = jnp.maximum(conv + bconv, 0.0)                     # bias + ReLU
        conv = jnp.where(valid, conv, 0.0)                        # 0-fill is safe post-ReLU
        pooled_rows.append(jnp.max(conv, axis=0, keepdims=True))  # (1, NF) global max-pool

    pooled = jnp.concatenate(pooled_rows, axis=0)                 # (BATCH, NF)
    # TODO(synk): nn.Dropout(p=0.5) is stochastic in training mode; identity here (eval mode).
    # FC with OUT == 1: VPU multiply + lane reduce (avoids a 1-wide MXU round trip).
    out_ref[...] = jnp.sum(pooled * fcw, axis=-1, keepdims=True) + fcb


def cnn_text_classifier(emb_pad, wpack_bf16, params):
    return pl.pallas_call(
        cnn_text_kernel,
        out_shape=jax.ShapeDtypeStruct((BATCH, OUT), jnp.float32),
        grid_spec=pltpu.PrefetchScalarGridSpec(
            num_scalar_prefetch=0,
            grid=(1,),                                            # single step: whole batch at once
            in_specs=[
                pl.BlockSpec((BATCH, SEQ_PAD, EMBED), lambda i: (0, 0, 0)),  # padded embeddings
                pl.BlockSpec((K_MAX * EMBED, NF), lambda i: (0, 0)),         # packed conv weights
                pl.BlockSpec((4, NF), lambda i: (0, 0)),                     # packed small params
            ],
            out_specs=pl.BlockSpec((BATCH, OUT), lambda i: (0, 0)),
        ),
        compiler_params=pltpu.CompilerParams(
            dimension_semantics=("arbitrary",)),
    )(emb_pad, wpack_bf16, params)


if __name__ == "__main__":
    key = jax.random.PRNGKey(0)
    keys = jax.random.split(key, 10)

    # --- deterministic parameter init (shapes from the module's __init__) ---
    embed_table = jax.random.normal(keys[0], (VOCAB, EMBED), jnp.float32) * 0.1
    tokens = jax.random.randint(keys[1], (BATCH, SEQ), 0, VOCAB)

    ws_kef, bs = [], []
    for i, k in enumerate(KERNEL_SIZES):
        # PyTorch Conv2d weight layout is (F, 1, k, E); squeeze channel, store as (k, E, F)
        w = jax.random.normal(keys[2 + i], (FILTERS, k, EMBED), jnp.float32) * 0.05
        b = jax.random.normal(keys[5 + i], (FILTERS,), jnp.float32) * 0.05
        ws_kef.append(jnp.transpose(w, (1, 2, 0)))
        bs.append(b)

    fcw = jax.random.normal(keys[8], (OUT, NF), jnp.float32) * 0.05   # PyTorch (out, in)
    fcb = jax.random.normal(keys[9], (OUT,), jnp.float32) * 0.05

    # --- host-side packing: 2 parameter arrays instead of 9 separate inputs ---
    assert OUT == 1, "FC is lowered as a VPU multiply+reduce; for OUT>1 pass fc weight separately"
    wpack = jnp.zeros((K_MAX * EMBED, NF), jnp.float32)
    params = jnp.zeros((4, NF), jnp.float32)
    for j, k in enumerate(KERNEL_SIZES):
        off = K_MAX - k           # this branch's taps start `off` rows into the widest window
        wpack = wpack.at[off * EMBED:(off + k) * EMBED,
                         j * FILTERS:(j + 1) * FILTERS].set(ws_kef[j].reshape(k * EMBED, FILTERS))
        params = params.at[0, j * FILTERS:(j + 1) * FILTERS].set(bs[j])
        params = params.at[3, j * FILTERS:(j + 1) * FILTERS].set(float(SEQ + k - 3))
    params = params.at[1, :].set(fcw.reshape(-1))
    params = params.at[2, 0:OUT].set(fcb)
    wpack_bf16 = wpack.astype(jnp.bfloat16)

    # --- glue: embedding lookup (gather) + zero-pad sequence to the widest conv's padding ---
    embeds = jnp.take(embed_table, tokens, axis=0)                    # (B, S, E)
    emb_pad = jnp.pad(embeds, ((0, 0), (MAX_PAD, MAX_PAD), (0, 0)))   # (B, SEQ_PAD, E)

    logits = cnn_text_classifier(emb_pad, wpack_bf16, params)
    logits = jax.block_until_ready(logits)

    # --- pure-JAX reference (same bf16-quantized matmul inputs, f32 accumulate) ---
    def ref_forward():
        emb_q = embeds.astype(jnp.bfloat16)
        feats = []
        for j, k in enumerate(KERNEL_SIZES):
            p = k - 2
            xp = jnp.pad(emb_q, ((0, 0), (p, p), (0, 0)))
            L = SEQ + k - 3
            wq = ws_kef[j].astype(jnp.bfloat16)
            conv = jnp.zeros((BATCH, L, FILTERS), jnp.float32)
            for dk in range(k):
                conv = conv + jnp.einsum('ble,ef->blf', xp[:, dk:dk + L, :], wq[dk],
                                         preferred_element_type=jnp.float32)
            conv = jnp.maximum(conv + bs[j][None, None, :], 0.0)
            feats.append(jnp.max(conv, axis=1))
        feat = jnp.concatenate(feats, axis=1)                         # (B, 3F)
        return feat @ fcw.T + fcb[None, :]

    ref = ref_forward()
    assert logits.shape == (BATCH, OUT)
    assert jnp.allclose(logits, ref, atol=1e-3, rtol=1e-3), (logits, ref)
    print("KERNEL_OK")
</pallas_src>

<mosaic_0001>
module attributes {stable_mosaic.version = 11 : i64} {
  func.func @cnn_text_kernel(%arg0: i32, %arg1: memref<2x22x32xf32, #tpu.memory_space<vmem>>, %arg2: memref<160x48xbf16, #tpu.memory_space<vmem>>, %arg3: memref<4x48xf32, #tpu.memory_space<vmem>>, %arg4: memref<2x1xf32, #tpu.memory_space<vmem>>) attributes {dimension_semantics = [#tpu.dimension_semantics<arbitrary>], iteration_bounds = array<i64: 1>, scalar_prefetch = 0 : i64, scratch_operands = 0 : i64, tpu.core_type = #tpu.core_type<tc>, window_params = [{pipeline_mode = #tpu.pipeline_mode<synchronous>, transform_indices = @transform_0, window_bounds = array<i64: 2, 22, 32>}, {pipeline_mode = #tpu.pipeline_mode<synchronous>, transform_indices = @transform_1, window_bounds = array<i64: 160, 48>}, {pipeline_mode = #tpu.pipeline_mode<synchronous>, transform_indices = @transform_2, window_bounds = array<i64: 4, 48>}, {pipeline_mode = #tpu.pipeline_mode<synchronous>, transform_indices = @transform_3, window_bounds = array<i64: 2, 1>}]} {
    %c0 = arith.constant 0 : index
    %c0_0 = arith.constant 0 : index
    %0 = vector.load %arg3[%c0, %c0_0] : memref<4x48xf32, #tpu.memory_space<vmem>>, vector<1x48xf32>
    %c1 = arith.constant 1 : index
    %c0_1 = arith.constant 0 : index
    %1 = vector.load %arg3[%c1, %c0_1] : memref<4x48xf32, #tpu.memory_space<vmem>>, vector<1x48xf32>
    %c2 = arith.constant 2 : index
    %c0_2 = arith.constant 0 : index
    %2 = vector.load %arg3[%c2, %c0_2] : memref<4x48xf32, #tpu.memory_space<vmem>>, vector<1x1xf32>
    %c3 = arith.constant 3 : index
    %c0_3 = arith.constant 0 : index
    %3 = vector.load %arg3[%c3, %c0_3] : memref<4x48xf32, #tpu.memory_space<vmem>>, vector<1x48xf32>
    %4 = tpu.iota {dimensions = array<i32: 0>} : vector<18x48xi32>
    %5 = arith.sitofp %4 : vector<18x48xi32> to vector<18x48xf32>
    %6 = vector.broadcast %3 : vector<1x48xf32> to vector<18x48xf32>
    %7 = arith.cmpf olt, %5, %6 : vector<18x48xf32>
    %c0_4 = arith.constant 0 : index
    %c0_5 = arith.constant 0 : index
    %8 = vector.load %arg2[%c0_4, %c0_5] : memref<160x48xbf16, #tpu.memory_space<vmem>>, vector<160x48xbf16>
    %c0_6 = arith.constant 0 : index
    %c0_7 = arith.constant 0 : index
    %c0_8 = arith.constant 0 : index
    %9 = vector.load %arg1[%c0_6, %c0_7, %c0_8] : memref<2x22x32xf32, #tpu.memory_space<vmem>>, vector<1x22x32xf32>
    %10 = vector.shape_cast %9 : vector<1x22x32xf32> to vector<22x32xf32>
    %11 = vector.extract_strided_slice %10 {offsets = [0, 0], sizes = [18, 32], strides = [1, 1]} : vector<22x32xf32> to vector<18x32xf32>
    %12 = vector.extract_strided_slice %10 {offsets = [1, 0], sizes = [18, 32], strides = [1, 1]} : vector<22x32xf32> to vector<18x32xf32>
    %13 = vector.extract_strided_slice %10 {offsets = [2, 0], sizes = [18, 32], strides = [1, 1]} : vector<22x32xf32> to vector<18x32xf32>
    %14 = vector.extract_strided_slice %10 {offsets = [3, 0], sizes = [18, 32], strides = [1, 1]} : vector<22x32xf32> to vector<18x32xf32>
    %15 = vector.extract_strided_slice %10 {offsets = [4, 0], sizes = [18, 32], strides = [1, 1]} : vector<22x32xf32> to vector<18x32xf32>
    %16 = tpu.concatenate %11, %12, %13, %14, %15 in 1 : vector<18x32xf32>, vector<18x32xf32>, vector<18x32xf32>, vector<18x32xf32>, vector<18x32xf32> -> vector<18x160xf32>
    %17 = arith.truncf %16 : vector<18x160xf32> to vector<18x160xbf16>
    %cst = arith.constant dense<0.000000e+00> : vector<18x48xf32>
    %18 = tpu.matmul %17, %8, %cst {dimension_numbers = #tpu.dot_dimension_numbers<[1], [0], [0], [1], [0, 0, 1, 1], [], []>} : vector<18x160xbf16>, vector<160x48xbf16>, vector<18x48xf32> -> vector<18x48xf32>
    %19 = vector.broadcast %0 : vector<1x48xf32> to vector<18x48xf32>
    %20 = arith.addf %18, %19 : vector<18x48xf32>
    %cst_9 = arith.constant 0.000000e+00 : f32
    %21 = vector.broadcast %cst_9 : f32 to vector<18x48xf32>
    %22 = arith.maximumf %20, %21 : vector<18x48xf32>
    %cst_10 = arith.constant 0.000000e+00 : f32
    %23 = vector.broadcast %cst_10 : f32 to vector<18x48xf32>
    %24 = arith.select %7, %22, %23 : vector<18x48xi1>, vector<18x48xf32>
    %cst_11 = arith.constant dense<0xFF800000> : vector<48xf32>
    %25 = vector.multi_reduction <maximumf>, %24, %cst_11 [0] : vector<18x48xf32> to vector<48xf32>
    %26 = vector.shape_cast %25 : vector<48xf32> to vector<1x48xf32>
    %c1_12 = arith.constant 1 : index
    %c0_13 = arith.constant 0 : index
    %c0_14 = arith.constant 0 : index
    %27 = vector.load %arg1[%c1_12, %c0_13, %c0_14] : memref<2x22x32xf32, #tpu.memory_space<vmem>>, vector<1x22x32xf32>
    %28 = vector.shape_cast %27 : vector<1x22x32xf32> to vector<22x32xf32>
    %29 = vector.extract_strided_slice %28 {offsets = [0, 0], sizes = [18, 32], strides = [1, 1]} : vector<22x32xf32> to vector<18x32xf32>
    %30 = vector.extract_strided_slice %28 {offsets = [1, 0], sizes = [18, 32], strides = [1, 1]} : vector<22x32xf32> to vector<18x32xf32>
    %31 = vector.extract_strided_slice %28 {offsets = [2, 0], sizes = [18, 32], strides = [1, 1]} : vector<22x32xf32> to vector<18x32xf32>
    %32 = vector.extract_strided_slice %28 {offsets = [3, 0], sizes = [18, 32], strides = [1, 1]} : vector<22x32xf32> to vector<18x32xf32>
    %33 = vector.extract_strided_slice %28 {offsets = [4, 0], sizes = [18, 32], strides = [1, 1]} : vector<22x32xf32> to vector<18x32xf32>
    %34 = tpu.concatenate %29, %30, %31, %32, %33 in 1 : vector<18x32xf32>, vector<18x32xf32>, vector<18x32xf32>, vector<18x32xf32>, vector<18x32xf32> -> vector<18x160xf32>
    %35 = arith.truncf %34 : vector<18x160xf32> to vector<18x160xbf16>
    %cst_15 = arith.constant dense<0.000000e+00> : vector<18x48xf32>
    %36 = tpu.matmul %35, %8, %cst_15 {dimension_numbers = #tpu.dot_dimension_numbers<[1], [0], [0], [1], [0, 0, 1, 1], [], []>} : vector<18x160xbf16>, vector<160x48xbf16>, vector<18x48xf32> -> vector<18x48xf32>
    %37 = vector.broadcast %0 : vector<1x48xf32> to vector<18x48xf32>
    %38 = arith.addf %36, %37 : vector<18x48xf32>
    %cst_16 = arith.constant 0.000000e+00 : f32
    %39 = vector.broadcast %cst_16 : f32 to vector<18x48xf32>
    %40 = arith.maximumf %38, %39 : vector<18x48xf32>
    %cst_17 = arith.constant 0.000000e+00 : f32
    %41 = vector.broadcast %cst_17 : f32 to vector<18x48xf32>
    %42 = arith.select %7, %40, %41 : vector<18x48xi1>, vector<18x48xf32>
    %cst_18 = arith.constant dense<0xFF800000> : vector<48xf32>
    %43 = vector.multi_reduction <maximumf>, %42, %cst_18 [0] : vector<18x48xf32> to vector<48xf32>
    %44 = vector.shape_cast %43 : vector<48xf32> to vector<1x48xf32>
    %45 = tpu.concatenate %26, %44 in 0 : vector<1x48xf32>, vector<1x48xf32> -> vector<2x48xf32>
    %46 = vector.broadcast %1 : vector<1x48xf32> to vector<2x48xf32>
    %47 = arith.mulf %45, %46 : vector<2x48xf32>
    %cst_19 = arith.constant dense<0.000000e+00> : vector<2xf32>
    %48 = vector.multi_reduction <add>, %47, %cst_19 [1] : vector<2x48xf32> to vector<2xf32>
    %49 = vector.shape_cast %48 : vector<2xf32> to vector<2x1xf32>
    %50 = vector.broadcast %2 : vector<1x1xf32> to vector<2x1xf32>
    %51 = arith.addf %49, %50 : vector<2x1xf32>
    %c0_20 = arith.constant 0 : index
    %c0_21 = arith.constant 0 : index
    %52 = vector.load %arg4[%c0_20, %c0_21] : memref<2x1xf32, #tpu.memory_space<vmem>>, vector<2x1xf32>
    tpu.vector_store %arg4[%c0_20, %c0_21], %51 {strides = array<i32>} : memref<2x1xf32, #tpu.memory_space<vmem>>, vector<2x1xf32>,
    return
  }
  func.func @transform_0(%arg0: i32) -> (i32, i32, i32) {
    %c0_i32 = arith.constant 0 : i32
    %c0_i32_0 = arith.constant 0 : i32
    %c0_i32_1 = arith.constant 0 : i32
    %c0_i32_2 = arith.constant 0 : i32
    return %c0_i32, %c0_i32_0, %c0_i32_1 : i32, i32, i32
  }
  func.func @transform_1(%arg0: i32) -> (i32, i32) {
    %c0_i32 = arith.constant 0 : i32
    %c0_i32_0 = arith.constant 0 : i32
    %c0_i32_1 = arith.constant 0 : i32
    return %c0_i32, %c0_i32_0 : i32, i32
  }
  func.func @transform_2(%arg0: i32) -> (i32, i32) {
    %c0_i32 = arith.constant 0 : i32
    %c0_i32_0 = arith.constant 0 : i32
    %c0_i32_1 = arith.constant 0 : i32
    return %c0_i32, %c0_i32_0 : i32, i32
  }
  func.func @transform_3(%arg0: i32) -> (i32, i32) {
    %c0_i32 = arith.constant 0 : i32
    %c0_i32_0 = arith.constant 0 : i32
    %c0_i32_1 = arith.constant 0 : i32
    return %c0_i32, %c0_i32_0 : i32, i32
  }
}

</mosaic_0001>

<bundles_post_ra>
// kernel: tpu_custom_call.1
= control target key start
LH: loop header
LB: loop body
LE: loop exit
PB: predicated region body
PF: predicated region fallthrough
CT: control target
= control target key end

     0   :  { %vm74_vm0 = vcmask 1045504   ;;  %vm59_vm1 = vcmask 1046528   ;;  %vm89_vm2 = vcmask 1044480   ;;  %v508_v3 = vmov 0   ;;  %s509_s25 = smov 64   ;;  %s510_s28 = smov 32   ;;  %s729_s0 = inlined_call_operand.vmem [shape: f32[2,22,32], index: 0, kind: input, shape index: {}]   ;;  %s730_s1 = inlined_call_operand.vmem [shape: bf16[160,48], index: 1, kind: input, shape index: {}]   ;;  %s731_s2 = inlined_call_operand.vmem [shape: f32[4,48], index: 2, kind: input, shape index: {}]   ;;  %s732_s3 = inlined_call_operand.vmem [shape: f32[2,1], index: 3, kind: output, shape index: {}]  }
   0x1   :  { %v535_v0 = vld [vmem:[%s729_s0] sm:$0xff]  ;;  %v540_v1 = vld [vmem:[%s729_s0 + $0x8] sm:$0xff]  ;;  %v545_v2 = vld [vmem:[%s729_s0 + $0x10] sm:$0x3f]  ;;  %199 = vmatprep.subr.bf16.mxu0 %v508_v3  ;;  %342 = vmatprep.subr.bf16.mxu1 %v508_v3  ;;  %vm104_vm3 = vcmask 1043456   ;;  %s511_s4 = smov 96  }
   0x2   :  { %v75_v4 = vrot.slane %v535_v0, 2  ;;  %v76_v5 = vrot.slane %v540_v1, 2  ;;  %v78_v6 = vrot.slane %v545_v2, 2  ;;  %v60_v7 = vrot.slane %v535_v0, 1  ;;  %v556_v8 = vld [vmem:[%s729_s0 + $0x18] sm:$0xff]  ;;  %v561_v9 = vld [vmem:[%s729_s0 + $0x20] sm:$0xff] }
   0x3   :  { %v61_v10 = vrot.slane %v540_v1, 1  ;;  %v63_v11 = vrot.slane %v545_v2, 1  ;;  %v568_v12 = vld [vmem:[%s729_s0 + $0x28] sm:$0x3f]  ;;  %v287_v13 = vrot.slane %v556_v8, 2  ;;  %v288_v14 = vrot.slane %v561_v9, 2 }
   0x4   :  { %v77_v15 = vsel %vm74_vm0, %v75_v4, %v76_v5  ;;  %v79_v16 = vsel %vm74_vm0, %v76_v5, %v78_v6  ;;  %v290_v17 = vrot.slane %v568_v12, 2  ;;  %v273_v18 = vrot.slane %v556_v8, 1  ;;  %v498_v23 = vld [vmem:[%s730_s1] sm:$0xff]   ;;  %v499_v32 = vld [vmem:[%s730_s1 + $0x8] sm:$0xff]   ;;  %v500_v44 = vld [vmem:[%s730_s1 + $0x10] sm:$0xff]  }
   0x5   :  { %v463_v19 = vpack.i.bf16 %v79_v16, %v77_v15  ;;  %v62_v20 = vsel %vm59_vm1, %v60_v7, %v61_v10  ;;  %v64_v21 = vsel %vm59_vm1, %v61_v10, %v63_v11  ;;  %v289_v22 = vsel %vm74_vm0, %v287_v13, %v288_v14  ;;  %200 = vmatpush1.bf16.msra.mxu0 %v498_v23  ;;  %v501_v50 = vld [vmem:[%s730_s1 + $0x18] sm:$0xff]   ;;  %v502_v61 = vld [vmem:[%s730_s1 + $0x20] sm:$0xff]   ;;  %v503_v63 = vld [vmem:[%s730_s1 + $0x28] sm:$0xff]  }
   0x6   :  { %v453_v24 = vpack.i.bf16 %v64_v21, %v62_v20  ;;  %v291_v25 = vsel %vm74_vm0, %v288_v14, %v290_v17  ;;  %v274_v26 = vrot.slane %v561_v9, 1  ;;  %v276_v27 = vrot.slane %v568_v12, 1  ;;  %343 = vmatpush1.bf16.msra.mxu1 %v498_v23  ;;  %201 = vmatprep.subr.bf16.mxu0 %v508_v3  ;;  %v504_v4 = vld [vmem:[%s730_s1 + $0x30] sm:$0xff]   ;;  %v505_v5 = vld [vmem:[%s730_s1 + $0x38] sm:$0xff]   ;;  %v507_v7 = vld [vmem:[%s730_s1 + $0x48] sm:$0xff]  }
   0x7   :  { %464 = vrot.lane.b32.xlu1 %v463_v19, %s509_s25  ;;  %v468_v28 = vpack.i.bf16 %v291_v25, %v289_v22  ;;  %v301_v29 = vrot.slane %v556_v8, 3  ;;  %v302_v30 = vrot.slane %v561_v9, 3  ;;  %v304_v31 = vrot.slane %v568_v12, 3  ;;  %344 = vmatprep.subr.bf16.mxu1 %v508_v3 }
   0x8   :  { %454 = vrot.lane.b32.xlu0 %v453_v24, %s510_s28  ;;  %v275_v33 = vsel %vm59_vm1, %v273_v18, %v274_v26  ;;  %v277_v34 = vsel %vm59_vm1, %v274_v26, %v276_v27  ;;  %v90_v35 = vrot.slane %v535_v0, 3  ;;  %v91_v36 = vrot.slane %v540_v1, 3 }
   0x9   :  { %v458_v37 = vpack.i.bf16 %v277_v34, %v275_v33  ;;  %v303_v38 = vsel %vm89_vm2, %v301_v29, %v302_v30  ;;  %v305_v39 = vsel %vm89_vm2, %v302_v30, %v304_v31  ;;  %v93_v40 = vrot.slane %v545_v2, 3  ;;  %202 = vmatpush1.bf16.msra.mxu0 %v499_v32 }
   0xa   :  { %v92_v41 = vsel %vm89_vm2, %v90_v35, %v91_v36  ;;  %v478_v42 = vpack.i.bf16 %v305_v39, %v303_v38  ;;  %345 = vmatpush1.bf16.msra.mxu1 %v499_v32  ;;  %v105_v46 = vrot.slane %v535_v0, 4  ;;  %203 = vmatprep.subr.bf16.mxu0 %v508_v3  ;;  %v106_v47 = vrot.slane %v540_v1, 4 }
   0xb   :  { %469 = vrot.lane.b32.xlu1 %v468_v28, %s509_s25  ;;  %v94_v43 = vsel %vm89_vm2, %v91_v36, %v93_v40  ;;  %346 = vmatprep.subr.bf16.mxu1 %v508_v3  ;;  %v488_v48 = vpack.i.bf16 %v290_v17, %v78_v6  ;;  %v616_v49 = vrot.slane %v545_v2, 4  ;;  %v315_v52 = vrot.slane %v556_v8, 4  ;;  %v506_v6 = vld [vmem:[%s730_s1 + $0x40] sm:$0xff]  }
   0xc   :  { %459 = vrot.lane.b32.xlu0 %v458_v37, %s510_s28  ;;  %v473_v45 = vpack.i.bf16 %v94_v43, %v92_v41  ;;  %v107_v51 = vsel %vm104_vm3, %v105_v46, %v106_v47  ;;  %v316_v53 = vrot.slane %v561_v9, 4  ;;  %v626_v54 = vrot.slane %v568_v12, 4 }
   0xd   :  { %204 = vmatpush1.bf16.msra.mxu0 %v500_v44  ;;  %v483_v55 = vpack.i.bf16 %v276_v27, %v63_v11  ;;  %v109_v56 = vsel %vm104_vm3, %v106_v47, %v616_v49  ;;  %v493_v62 = vpack.i.bf16 %v304_v31, %v93_v40  ;;  %vm113_vm4 = vcmask 261120  }
   0xe   :  { %347 = vmatpush1.bf16.msra.mxu1 %v500_v44  ;;  %205 = vmatprep.subr.bf16.mxu0 %v508_v3  ;;  %v317_v57 = vsel %vm104_vm3, %v315_v52, %v316_v53  ;;  %v319_v58 = vsel %vm104_vm3, %v316_v53, %v626_v54  ;;  %v126_v59 = vpack.c.bf16 %v109_v56, %v107_v51  ;;  %vm117_vm5 = vcmask 523264  }
   0xf   :  { %479 = vrot.lane.b32.xlu1 %v478_v42, %s511_s4  ;;  %348 = vmatprep.subr.bf16.mxu1 %v508_v3  ;;  %v333_v60 = vpack.c.bf16 %v319_v58, %v317_v57  ;;  %vm121_vm6 = vcmask 785408   ;;  %v335_v30 = vpack.c.bf16 %v626_v54, %v626_v54  ;;  %v128_v39 = vpack.c.bf16 %v616_v49, %v616_v49  ;;  %v429_v58 = vld [vmem:[%s731_s2] ss:$0 sm:$0xff] }
  0x10   :  { %474 = vrot.lane.b32.xlu0 %v473_v45, %s511_s4  ;;  %440 = vmatprep.mubr.msk.bf16.mxu0 %vm113_vm4, %v126_v59  ;;  %vm253_vm9 = vcmask 392192   ;;  %vm256_vm11 = vcmask 386048   ;;  %vm407_vm12 = vcmask 1040384   ;;  %vm422_vm13 = vcmask 1024  }
  0x11   :  { %206 = vmatpush1.bf16.msra.mxu0 %v501_v50  ;;  %445 = vmatprep.mubr.msk.bf16.mxu1 %vm113_vm4, %v333_v60  ;;  %v428_v60 = vld [vmem:[%s731_s2 + $0x3] ss:$0 sm:$0xff] }
  0x12   :  { %349 = vmatpush1.bf16.msra.mxu1 %v501_v50  ;;  %207 = vmatprep.subr.bf16.mxu0 %v508_v3 }
  0x13   :  { %489 = vrot.lane.b32.xlu1 %v488_v48, %s509_s25  ;;  %350 = vmatprep.subr.bf16.mxu1 %v508_v3 }
  0x14   :  { %484 = vrot.lane.b32.xlu0 %v483_v55, %s510_s28 }
  0x15   :  { %208 = vmatpush1.bf16.msra.mxu0 %v502_v61 }
  0x16   :  { %351 = vmatpush1.bf16.msra.mxu1 %v502_v61  ;;  %209 = vmatprep.subr.bf16.mxu0 %v508_v3 }
  0x17   :  { %352 = vmatprep.subr.bf16.mxu1 %v508_v3 }
  0x18   :  { %494 = vrot.lane.b32.xlu0 %v493_v62, %s511_s4 }
  0x19   :  { %210 = vmatpush1.bf16.msra.mxu0 %v503_v63 }
  0x1a   :  { %353 = vmatpush1.bf16.msra.mxu1 %v503_v63  ;;  %211 = vmatprep.subr.bf16.mxu0 %v508_v3 }
  0x1b   :  { %354 = vmatprep.subr.bf16.mxu1 %v508_v3 }
  0x1d   :  { %212 = vmatpush1.bf16.msra.mxu0 %v504_v4 }
  0x1e   :  { %355 = vmatpush1.bf16.msra.mxu1 %v504_v4  ;;  %213 = vmatprep.subr.bf16.mxu0 %v508_v3 }
  0x1f   :  { %356 = vmatprep.subr.bf16.mxu1 %v508_v3 }
  0x21   :  { %214 = vmatpush1.bf16.msra.mxu0 %v505_v5 }
  0x22   :  { %357 = vmatpush1.bf16.msra.mxu1 %v505_v5  ;;  %215 = vmatprep.subr.bf16.mxu0 %v508_v3 }
  0x23   :  { %358 = vmatprep.subr.bf16.mxu1 %v508_v3 }
  0x25   :  { %216 = vmatpush1.bf16.msra.mxu0 %v506_v6 }
  0x26   :  { %359 = vmatpush1.bf16.msra.mxu1 %v506_v6  ;;  %217 = vmatprep.subr.bf16.mxu0 %v508_v3 }
  0x27   :  { %360 = vmatprep.subr.bf16.mxu1 %v508_v3 }
  0x29   :  { %218 = vmatpush1.bf16.msra.mxu0 %v507_v7 }
  0x2a   :  { %361 = vmatpush1.bf16.msra.mxu1 %v507_v7 }
  0x79   :  { %v465_v10 = vpop.permute.xlu1 %464 }
  0x7a   :  { %v455_v11 = vpop.permute.xlu0 %454  ;;  %v467_v21 = vunpack.i.h.bf16 %v465_v10  ;;  %v466_v22 = vunpack.i.l.bf16 %v465_v10 }
  0x7b   :  { %v457_v13 = vunpack.i.h.bf16 %v455_v11  ;;  %v456_v14 = vunpack.i.l.bf16 %v455_v11 }
  0x7d   :  { %v470_v15 = vpop.permute.xlu1 %469  ;;  %v115_v23 = vsel %vm113_vm4, %v540_v1, %v457_v13  ;;  %v114_v3 = vsel %vm113_vm4, %v535_v0, %v456_v14 }
  0x7e   :  { %v460_v16 = vpop.permute.xlu0 %459  ;;  %v472_v17 = vunpack.i.h.bf16 %v470_v15  ;;  %v471_v18 = vunpack.i.l.bf16 %v470_v15  ;;  %v118_v0 = vsel %vm117_vm5, %v114_v3, %v466_v22 }
  0x7f   :  { %v462_v19 = vunpack.i.h.bf16 %v460_v16  ;;  %v461_v20 = vunpack.i.l.bf16 %v460_v16 }
  0x81   :  { %v324_v24 = vsel %vm113_vm4, %v561_v9, %v462_v19  ;;  %v323_v25 = vsel %vm113_vm4, %v556_v8, %v461_v20  ;;  %v480_v26 = vpop.permute.xlu1 %479  ;;  %v119_v9 = vsel %vm117_vm5, %v115_v23, %v467_v21 }
  0x82   :  { %v482_v27 = vunpack.i.h.bf16 %v480_v26  ;;  %v481_v28 = vunpack.i.l.bf16 %v480_v26  ;;  %v475_v29 = vpop.permute.xlu0 %474  ;;  %v326_v1 = vsel %vm117_vm5, %v323_v25, %v471_v18  ;;  %v327_v33 = vsel %vm117_vm5, %v324_v24, %v472_v17 }
  0x83   :  { %v477_v31 = vunpack.i.h.bf16 %v475_v29  ;;  %v476_v32 = vunpack.i.l.bf16 %v475_v29 }
  0x84   :  { %v329_v34 = vsel %vm121_vm6, %v326_v1, %v481_v28  ;;  %v330_v8 = vsel %vm121_vm6, %v327_v33, %v482_v27 }
  0x85   :  { %v490_v35 = vpop.permute.xlu1 %489  ;;  %v122_v36 = vsel %vm121_vm6, %v118_v0, %v476_v32  ;;  %v123_v37 = vsel %vm121_vm6, %v119_v9, %v477_v31  ;;  %v332_v38 = vpack.c.bf16 %v330_v8, %v329_v34 }
  0x86   :  { %v485_v40 = vpop.permute.xlu0 %484  ;;  %v125_v41 = vpack.c.bf16 %v123_v37, %v122_v36  ;;  %v492_v44 = vunpack.i.h.bf16 %v490_v35  ;;  %v491_v45 = vunpack.i.l.bf16 %v490_v35 }
  0x87   :  { %v487_v42 = vunpack.i.h.bf16 %v485_v40  ;;  %v486_v43 = vunpack.i.l.bf16 %v485_v40  ;;  %375 = vmatmul.mubr.bf16.vlgmr.msra.gmra.mrb[0].mxu1 %v332_v38 }
  0x88   :  { %232 = vmatmul.mubr.bf16.vlgmr.msra.gmra.mrb[0].mxu0 %v125_v41  ;;  %446 = vmatprep.mubr.msk.bf16.mxu1 %vm113_vm4, %v335_v30 }
  0x89   :  { %v325_v46 = vsel %vm113_vm4, %v568_v12, %v487_v42  ;;  %v116_v47 = vsel %vm113_vm4, %v545_v2, %v486_v43  ;;  %441 = vmatprep.mubr.msk.bf16.mxu0 %vm113_vm4, %v128_v39  ;;  %v19_v12 = vlaneseq }
  0x8a   :  { %v495_v48 = vpop.permute.xlu0 %494  ;;  %v120_v51 = vsel %vm117_vm5, %v116_v47, %v491_v45  ;;  %v328_v52 = vsel %vm117_vm5, %v325_v46, %v492_v44 }
  0x8b   :  { %v497_v49 = vunpack.i.h.bf16 %v495_v48  ;;  %v496_v50 = vunpack.i.l.bf16 %v495_v48  ;;  %v20_v57 = vshrl.u32 %v19_v12, 7  ;;  %v447_v12 = vld [vmem:[%s731_s2 + $0x1] ss:$0 sm:$0xff] }
  0x8d   :  { %v124_v53 = vsel %vm121_vm6, %v120_v51, %v496_v50  ;;  %v331_v54 = vsel %vm121_vm6, %v328_v52, %v497_v49  ;;  %v21_v2 = vadd.s32 8, %v20_v57  ;;  %v23_v59 = vcvt.s32.f32 %v20_v57 }
  0x8e   :  { %v127_v55 = vpack.c.bf16 %v124_v53, %v124_v53  ;;  %v334_v56 = vpack.c.bf16 %v331_v54, %v331_v54  ;;  %v22_v17 = vadd.s32 16, %v20_v57 }
  0x8f   :  { %v24_v62 = vcvt.s32.f32 %v21_v2  ;;  %vm709_vm7 = vcmp.lt.f32.partialorder %v23_v59, %v428_v60 }
  0x90   :  { %240 = vmatmul.mubr.bf16.gmra.mrb[4].mxu0 %v127_v55  ;;  %383 = vmatmul.mubr.bf16.gmra.mrb[4].mxu1 %v334_v56  ;;  %v25_v25 = vcvt.s32.f32 %v22_v17 }
  0x91   :  { %vm31_vm8 = vcmp.lt.f32.partialorder %v24_v62, %v428_v60 }
  0x92   :  { %vm32_vm10 = vcmp.lt.f32.partialorder %v25_v25, %v428_v60 }
 0x15a   :  { %v376_v61 = vpop.f32.mrb[0].mxu1 }
 0x15b   :  { %v233_v63 = vpop.f32.mrb[0].mxu0  ;;  %v377_v4 = vadd.f32 %v429_v58, %v376_v61  ;;  %v378_v5 = vpop.f32.mrb[1].mxu1  ;;  %v448_v61 = vld [vmem:[%s731_s2 + $0x2] ss:$0 sm:$0xff] }
 0x15c   :  { %v234_v7 = vadd.f32 %v429_v58, %v233_v63  ;;  %v235_v10 = vpop.f32.mrb[1].mxu0  ;;  %v379_v11 = vpop.f32.mrb[2].mxu1 }
 0x15d   :  { %v390_v13 = vmax.f32 %v377_v4, 0.0  ;;  %v236_v14 = vpop.f32.mrb[2].mxu0  ;;  %v380_v15 = vadd.f32 %v429_v58, %v379_v11  ;;  %v381_v16 = vpop.f32.mrb[3].mxu1 }
 0x15e   :  { %v247_v18 = vmax.f32 %v234_v7, 0.0  ;;  %v237_v19 = vadd.f32 %v429_v58, %v236_v14  ;;  %v238_v20 = vpop.f32.mrb[3].mxu0 }
 0x15f   :  { %v393_v21 = vsel %vm709_vm7, %v390_v13, 0.0  ;;  %v391_v22 = vmax.f32 %v380_v15, 0.0 }
 0x160   :  { %v250_v23 = vsel %vm709_vm7, %v247_v18, 0.0  ;;  %v248_v3 = vmax.f32 %v237_v19, 0.0  ;;  %v396_v26 = vsel %vm253_vm9, %v393_v21, -inf }
 0x161   :  { %v394_v24 = vsel %vm31_vm8, %v391_v22, 0.0  ;;  %v254_v29 = vsel %vm253_vm9, %v250_v23, -inf }
 0x162   :  { %v251_v27 = vsel %vm31_vm8, %v248_v3, 0.0  ;;  %v397_v28 = vsel %vm253_vm9, %v394_v24, -inf }
 0x163   :  { %v255_v30 = vsel %vm253_vm9, %v251_v27, -inf  ;;  %v399_v31 = vmax.f32 %v396_v26, %v397_v28  ;;  %v241_v32 = vpop.f32.mrb[4].mxu0  ;;  %v384_v1 = vpop.f32.mrb[4].mxu1 }
 0x164   :  { %v258_v33 = vmax.f32 %v254_v29, %v255_v30  ;;  %v242_v0 = vadd.f32 %v429_v58, %v241_v32  ;;  %v385_v9 = vadd.f32 %v429_v58, %v384_v1  ;;  %v243_v34 = vpop.f32.mrb[5].mxu0  ;;  %v386_v8 = vpop.f32.mrb[5].mxu1 }
 0x165   :  { %v244_v35 = vpop.f32.mrb[6].mxu0  ;;  %v387_v36 = vpop.f32.mrb[6].mxu1 }
 0x166   :  { %v249_v37 = vmax.f32 %v242_v0, 0.0  ;;  %v392_v38 = vmax.f32 %v385_v9, 0.0  ;;  %v245_v39 = vpop.f32.mrb[7].mxu0  ;;  %v388_v40 = vpop.f32.mrb[7].mxu1 }
 0x168   :  { %v252_v41 = vsel %vm32_vm10, %v249_v37, 0.0  ;;  %v395_v42 = vsel %vm32_vm10, %v392_v38, 0.0 }
 0x169   :  { %v257_v43 = vsel %vm256_vm11, %v252_v41, -inf  ;;  %v398_v44 = vsel %vm256_vm11, %v395_v42, -inf }
 0x16a   :  { %v259_v45 = vmax.f32 %v258_v33, %v257_v43  ;;  %v400_v46 = vmax.f32 %v399_v31, %v398_v44 }
 0x16c   :  { %v260_v47 = vrot.slane %v259_v45, 4  ;;  %v401_v48 = vrot.slane %v400_v46, 4 }
 0x16e   :  { %v261_v49 = vmax.f32 %v259_v45, %v260_v47  ;;  %v402_v50 = vmax.f32 %v400_v46, %v401_v48 }
 0x170   :  { %v262_v51 = vrot.slane %v261_v49, 2  ;;  %v403_v52 = vrot.slane %v402_v50, 2 }
 0x172   :  { %v263_v53 = vmax.f32 %v261_v49, %v262_v51  ;;  %v404_v54 = vmax.f32 %v402_v50, %v403_v52 }
 0x174   :  { %v264_v55 = vrot.slane %v263_v53, 1  ;;  %v405_v56 = vrot.slane %v404_v54, 1 }
 0x176   :  { %v265_v57 = vmax.f32 %v263_v53, %v264_v55  ;;  %v406_v2 = vmax.f32 %v404_v54, %v405_v56 }
 0x178   :  { %v408_v58 = vsel %vm407_vm12, %v265_v57, %v406_v2 }
 0x179   :  { %v413_v59 = vmul.f32 %v447_v12, %v408_v58 }
 0x17b   :  { %v414_v60 = vsel %vm256_vm11, %v413_v59, 0.0 }
 0x17c   :  { %415 = vadd.xlane.f32.xlu1 %v414_v60 }
 0x209   :  { %v416_v62 = vpop.xlane.xlu1 %415 }
 0x20a   :  { %v421_v63 = vadd.f32 %v448_v61, %v416_v62 }
 0x20c   :  { %423 = vst.msk [vmem:[%s732_s3] sm:$0x3] %vm422_vm13, %v421_v63 }

</bundles_post_ra>
